<compile_context>
chip_gen: v6e
topology: v6e:2x2x1
jax: 0.10.0
libtpu: 0.0.40
codegen_flags: <defaults>
</compile_context>

<pallas_src>
import jax
import jax.numpy as jnp
from jax.experimental import pallas as pl
from jax.experimental.pallas import tpu as pltpu

_LANES = 128
_NUM_CORES = 2            # megacore split on v7x; harmless (serial) on 1-TC chips
_PAD_LOGIT = -30000.0     # tanh saturates -> p1 == 0.0 exactly for padded rows


def _round_up(x, m):
    return ((x + m - 1) // m) * m


def _cdiv(a, b):
    return (a + b - 1) // b


def _f1_partials_kernel(d_ref, y_ref, part_ref):
    j = pl.program_id(1)

    @pl.when(j == 0)
    def _init():
        part_ref[...] = jnp.zeros_like(part_ref)

    d = d_ref[...]                          # f32 (block_rows, 128): x1 - x0
    y = y_ref[...].astype(jnp.float32)      # 0/1 labels (pad rows == 0)

    # 2-class softmax prob of class 1 == sigmoid(d). tanh form uses the EUP
    # slot (no f32 divide on the VALU) and is exact (== 0) for padded rows.
    p1 = 0.5 * jnp.tanh(0.5 * d) + 0.5

    s_p1 = jnp.sum(p1, axis=0, keepdims=True)        # (1, 128) sum of p1
    s_y = jnp.sum(y, axis=0, keepdims=True)          # (1, 128) sum of labels
    tp1 = jnp.sum(y * p1, axis=0, keepdims=True)     # (1, 128) class-1 TP

    # Output block is the resident accumulator (same block index across j).
    part_ref[...] += jnp.concatenate([s_p1, s_y, tp1], axis=0)


def f1_loss(y_pred, y_true, epsilon=1e-07, *, max_block_rows=2048):
    assert y_pred.ndim == 2
    assert y_true.ndim == 1
    assert max_block_rows % 32 == 0
    n, c = y_pred.shape
    assert c == 2, "reference module one-hots with 2 classes"

    # Single lane-dense diff slab (f32 keeps 1e-5 parity with the reference).
    yp = y_pred.astype(jnp.float32)
    d = yp[:, 1] - yp[:, 0]

    rows = max(_cdiv(n, _LANES), 1)
    # Pick steps/core first at the max block size, then shrink block_rows so
    # padding is bounded by ~NUM_CORES*32 rows (avoids huge tail padding).
    steps_per_core = _cdiv(rows, _NUM_CORES * max_block_rows)
    block_rows = _round_up(_cdiv(rows, _NUM_CORES * steps_per_core), 32)
    rows_pad = _NUM_CORES * steps_per_core * block_rows
    pad = rows_pad * _LANES - n

    d_slab = jnp.pad(d, (0, pad), constant_values=_PAD_LOGIT).reshape(
        rows_pad, _LANES)
    y_slab = jnp.pad(y_true.astype(jnp.int8), (0, pad)).reshape(
        rows_pad, _LANES)

    def _row_map(ci, j):
        return (ci * steps_per_core + j, 0)

    part = pl.pallas_call(
        _f1_partials_kernel,
        out_shape=jax.ShapeDtypeStruct((_NUM_CORES, 3, _LANES), jnp.float32),
        grid_spec=pltpu.PrefetchScalarGridSpec(
            num_scalar_prefetch=0,
            grid=(_NUM_CORES, steps_per_core),
            in_specs=[
                pl.BlockSpec((block_rows, _LANES), _row_map),
                pl.BlockSpec((block_rows, _LANES), _row_map),
            ],
            # Leading dim squeezed: kernel sees a (3, 128) per-core accumulator.
            out_specs=pl.BlockSpec((None, 3, _LANES), lambda ci, j: (ci, 0, 0)),
        ),
        compiler_params=pltpu.CompilerParams(
            dimension_semantics=("parallel", "arbitrary")),
    )(d_slab, y_slab)

    # ~20-flop finalize in plain JAX (exact identities; keeps kernel core-parallel).
    sums = jnp.sum(part, axis=(0, 2))            # (3,) -> [sum p1, sum y, tp1]
    s_p1, s_y, tp1 = sums[0], sums[1], sums[2]
    eps = jnp.float32(epsilon)
    count = jnp.float32(n)

    tp0 = count - s_y - s_p1 + tp1               # sum (1-y)*(1-p1)
    fp1 = s_p1 - tp1                             # sum (1-y)*p1
    fn1 = s_y - tp1                              # sum y*(1-p1)
    fp0 = fn1                                    # sum y*(1-p1)   (class-0 FP)
    fn0 = fp1                                    # sum (1-y)*p1   (class-0 FN)

    def _f1(tp, fp, fn):
        precision = tp / (tp + fp + eps)
        recall = tp / (tp + fn + eps)
        f1 = 2.0 * precision * recall / (precision + recall + eps)
        return jnp.clip(f1, eps, 1.0 - eps)

    return 1.0 - 0.5 * (_f1(tp0, fp0, fn0) + _f1(tp1, fp1, fn1))


def _f1_loss_ref(y_pred, y_true, epsilon=1e-07):
    # pure-JAX reference mirroring the PyTorch forward exactly
    y_true_oh = jax.nn.one_hot(y_true, 2, dtype=jnp.float32)
    y_prob = jax.nn.softmax(y_pred.astype(jnp.float32), axis=1)
    tp = jnp.sum(y_true_oh * y_prob, axis=0)
    fp = jnp.sum((1 - y_true_oh) * y_prob, axis=0)
    fn = jnp.sum(y_true_oh * (1 - y_prob), axis=0)
    precision = tp / (tp + fp + epsilon)
    recall = tp / (tp + fn + epsilon)
    f1 = 2 * (precision * recall) / (precision + recall + epsilon)
    f1 = jnp.clip(f1, epsilon, 1 - epsilon)
    return 1 - jnp.mean(f1)


if __name__ == "__main__":
    key = jax.random.PRNGKey(0)
    k1, k2, k3, k4 = jax.random.split(key, 4)

    # Primary small-shape check: batch=8, 2 classes (binary F1).
    N1 = 8
    y_pred1 = jax.random.normal(k1, (N1, 2), dtype=jnp.float32)
    y_true1 = jax.random.randint(k2, (N1,), 0, 2, dtype=jnp.int32)
    loss1 = jax.block_until_ready(f1_loss(y_pred1, y_true1))
    ref1 = jax.block_until_ready(_f1_loss_ref(y_pred1, y_true1))
    assert jnp.allclose(loss1, ref1, atol=1e-5, rtol=1e-5), (loss1, ref1)

    # Secondary check: multi-step per-core accumulation + tail padding
    # (N not a multiple of 128) with small blocks -> grid (2, 2).
    N2 = 8205
    y_pred2 = jax.random.normal(k3, (N2, 2), dtype=jnp.float32)
    y_true2 = jax.random.randint(k4, (N2,), 0, 2, dtype=jnp.int32)
    loss2 = jax.block_until_ready(f1_loss(y_pred2, y_true2, max_block_rows=32))
    ref2 = jax.block_until_ready(_f1_loss_ref(y_pred2, y_true2))
    assert jnp.allclose(loss2, ref2, atol=1e-4, rtol=1e-4), (loss2, ref2)

    print("KERNEL_OK")
</pallas_src>

<mosaic_0001>
module attributes {stable_mosaic.version = 11 : i64} {
  func.func @_f1_partials_kernel(%arg0: i32, %arg1: i32, %arg2: memref<32x128xf32, #tpu.memory_space<vmem>>, %arg3: memref<32x128xi8, #tpu.memory_space<vmem>>, %arg4: memref<1x3x128xf32, #tpu.memory_space<vmem>>) attributes {dimension_semantics = [#tpu.dimension_semantics<parallel>, #tpu.dimension_semantics<arbitrary>], iteration_bounds = array<i64: 2, 1>, scalar_prefetch = 0 : i64, scratch_operands = 0 : i64, tpu.core_type = #tpu.core_type<tc>, window_params = [{transform_indices = @transform_0, window_bounds = array<i64: 32, 128>}, {transform_indices = @transform_1, window_bounds = array<i64: 32, 128>}, {transform_indices = @transform_2, window_bounds = array<i64: 1, 3, 128>}]} {
    %c0_i32 = arith.constant 0 : i32
    %0 = arith.cmpi eq, %arg1, %c0_i32 : i32
    %1 = arith.extui %0 : i1 to i32
    %c0_i32_0 = arith.constant 0 : i32
    %2 = arith.cmpi ne, %1, %c0_i32_0 : i32
    scf.if %2 {
      %cst_15 = arith.constant 0.000000e+00 : f32
      %27 = vector.broadcast %cst_15 : f32 to vector<3x128xf32>
      %c0_16 = arith.constant 0 : index
      %c0_17 = arith.constant 0 : index
      %c0_18 = arith.constant 0 : index
      %28 = vector.load %arg4[%c0_16, %c0_17, %c0_18] : memref<1x3x128xf32, #tpu.memory_space<vmem>>, vector<1x3x128xf32>
      %29 = vector.shape_cast %28 : vector<1x3x128xf32> to vector<3x128xf32>
      %30 = vector.shape_cast %27 : vector<3x128xf32> to vector<1x3x128xf32>
      tpu.vector_store %arg4[%c0_16, %c0_17, %c0_18], %30 {strides = array<i32>} : memref<1x3x128xf32, #tpu.memory_space<vmem>>, vector<1x3x128xf32>,
    } else {
    }
    %c0 = arith.constant 0 : index
    %c0_1 = arith.constant 0 : index
    %3 = vector.load %arg2[%c0, %c0_1] : memref<32x128xf32, #tpu.memory_space<vmem>>, vector<32x128xf32>
    %c0_2 = arith.constant 0 : index
    %c0_3 = arith.constant 0 : index
    %4 = vector.load %arg3[%c0_2, %c0_3] : memref<32x128xi8, #tpu.memory_space<vmem>>, vector<32x128xi8>
    %5 = arith.sitofp %4 : vector<32x128xi8> to vector<32x128xf32>
    %cst = arith.constant 5.000000e-01 : f32
    %6 = vector.broadcast %cst : f32 to vector<32x128xf32>
    %7 = arith.mulf %6, %3 : vector<32x128xf32>
    %8 = math.tanh %7 : vector<32x128xf32>
    %cst_4 = arith.constant 5.000000e-01 : f32
    %9 = vector.broadcast %cst_4 : f32 to vector<32x128xf32>
    %10 = arith.mulf %9, %8 : vector<32x128xf32>
    %cst_5 = arith.constant 5.000000e-01 : f32
    %11 = vector.broadcast %cst_5 : f32 to vector<32x128xf32>
    %12 = arith.addf %10, %11 : vector<32x128xf32>
    %cst_6 = arith.constant dense<0.000000e+00> : vector<128xf32>
    %13 = vector.multi_reduction <add>, %12, %cst_6 [0] : vector<32x128xf32> to vector<128xf32>
    %14 = vector.shape_cast %13 : vector<128xf32> to vector<1x128xf32>
    %cst_7 = arith.constant dense<0.000000e+00> : vector<128xf32>
    %15 = vector.multi_reduction <add>, %5, %cst_7 [0] : vector<32x128xf32> to vector<128xf32>
    %16 = vector.shape_cast %15 : vector<128xf32> to vector<1x128xf32>
    %17 = arith.mulf %5, %12 : vector<32x128xf32>
    %cst_8 = arith.constant dense<0.000000e+00> : vector<128xf32>
    %18 = vector.multi_reduction <add>, %17, %cst_8 [0] : vector<32x128xf32> to vector<128xf32>
    %19 = vector.shape_cast %18 : vector<128xf32> to vector<1x128xf32>
    %c0_9 = arith.constant 0 : index
    %c0_10 = arith.constant 0 : index
    %c0_11 = arith.constant 0 : index
    %20 = vector.load %arg4[%c0_9, %c0_10, %c0_11] : memref<1x3x128xf32, #tpu.memory_space<vmem>>, vector<1x3x128xf32>
    %21 = vector.shape_cast %20 : vector<1x3x128xf32> to vector<3x128xf32>
    %22 = tpu.concatenate %14, %16, %19 in 0 : vector<1x128xf32>, vector<1x128xf32>, vector<1x128xf32> -> vector<3x128xf32>
    %23 = arith.addf %21, %22 : vector<3x128xf32>
    %c0_12 = arith.constant 0 : index
    %c0_13 = arith.constant 0 : index
    %c0_14 = arith.constant 0 : index
    %24 = vector.load %arg4[%c0_12, %c0_13, %c0_14] : memref<1x3x128xf32, #tpu.memory_space<vmem>>, vector<1x3x128xf32>
    %25 = vector.shape_cast %24 : vector<1x3x128xf32> to vector<3x128xf32>
    %26 = vector.shape_cast %23 : vector<3x128xf32> to vector<1x3x128xf32>
    tpu.vector_store %arg4[%c0_12, %c0_13, %c0_14], %26 {strides = array<i32>} : memref<1x3x128xf32, #tpu.memory_space<vmem>>, vector<1x3x128xf32>,
    return
  }
  func.func @transform_0(%arg0: i32, %arg1: i32) -> (i32, i32) {
    %c1_i32 = arith.constant 1 : i32
    %0 = arith.muli %arg0, %c1_i32 : i32
    %1 = arith.addi %0, %arg1 : i32
    %c0_i32 = arith.constant 0 : i32
    %c0_i32_0 = arith.constant 0 : i32
    return %1, %c0_i32 : i32, i32
  }
  func.func @transform_1(%arg0: i32, %arg1: i32) -> (i32, i32) {
    %c1_i32 = arith.constant 1 : i32
    %0 = arith.muli %arg0, %c1_i32 : i32
    %1 = arith.addi %0, %arg1 : i32
    %c0_i32 = arith.constant 0 : i32
    %c0_i32_0 = arith.constant 0 : i32
    return %1, %c0_i32 : i32, i32
  }
  func.func @transform_2(%arg0: i32, %arg1: i32) -> (i32, i32, i32) {
    %c0_i32 = arith.constant 0 : i32
    %c0_i32_0 = arith.constant 0 : i32
    %c0_i32_1 = arith.constant 0 : i32
    return %arg0, %c0_i32, %c0_i32_0 : i32, i32, i32
  }
}

</mosaic_0001>

<bundles_post_ra>
// kernel: tpu_custom_call.1
= control target key start
LH: loop header
LB: loop body
LE: loop exit
PB: predicated region body
PF: predicated region fallthrough
CT: control target
= control target key end

     0   :  { %7 = vsyncpa [#allocation3], 0  ;;  %s738_s0 = inlined_call_operand.hbm [shape: f32[64,128], index: 0, kind: input, shape index: {}]   ;;  %s739_s1 = inlined_call_operand.hbm [shape: s8[64,128], index: 1, kind: input, shape index: {}]   ;;  %s740_s2 = inlined_call_operand.vmem [shape: f32[2,3,128], index: 2, kind: output, shape index: {}]  }
   0x1   :  { %9 = vsyncpa [#allocation3 + $0x1], 0 }
   0x2   :  { %10 = vsyncpa [#allocation5], 0 }
   0x3   :  { %12 = vsyncpa [#allocation5 + $0x1], 0  ;;  %s609_s9 = smov 0   ;;  %s611_s10 = smov 0  }
   0x4   :  { %s613_s11 = smov 0   ;;  %s615_s12 = smov 0  }
   0x5   :  { %s617_s13 = smov 0   ;;  %s619_s14 = smov 0  }
   0x6 LB: > { %s390_s15 = sadd.s32 4294967295, %s587_s14   ;;  %s30_s16 = sadd.s32 1, %s583_s13  ;;  %s587_s14 = sphi %s619_s14, %s18_s14   ;;  %s583_s13 = sphi %s617_s13, %s749_s13   ;;  %s579_s12 = sphi %s615_s12, %s748_s12   ;;  %s575_s11 = sphi %s613_s11, %s747_s11   ;;  %s571_s10 = sphi %s611_s10, %s746_s10   ;;  %s567_s9 = sphi %s609_s9, %s745_s9  }
   0x7   : > { %p32_p0 = scmp.ge.s32.totalorder %s30_s16, 2  ;;  %s39_s17 = sadd.s32 1, %s575_s11 }
   0x8   : > { %p46_p1 = scmp.ne.s32.totalorder %s575_s11, %s571_s10  ;;  %p47_p2 = scmp.eq.s32.totalorder %s587_s14, 0 }
   0x9   : > { %s751_s16 = smov (%p32_p0, %s30_s16), 0  ;;  %p52_p4 = scmp.ne.s32.totalorder %s571_s10, %s567_s9 }
   0xa   : > { %p645_p3 = por %p47_p2, %p46_p1  ;;  %s36_s19 = ssub.s32 %s583_s13, %s751_s16 }
   0xb   : > { %p53_p5 = scmp.eq.s32.totalorder %s390_s15, 0  ;;  %p37_p6 = scmp.eq.s32.totalorder %s36_s19, 0 }
   0xc   : > { %p417_p8 = scmp.lt.s32.totalorder %s587_s14, 2  ;;  %s661_s22 = sand.u32 1, %s575_s11  }
   0xd   : > { %p652_p7 = por %p53_p5, %p52_p4  ;;  %s405_s23 = sshll.u32 %s583_s13, 9 }
   0xe   : > { %s658_s21 = scalar_select %p37_p6, %s575_s11, %s39_s17  }
   0xf   : > { %s394_s24 = sshll.u32 %s661_s22, 5  ;;  %s141_s27 = scalar_lea.hbm %s738_s0, %s405_s23 }
  0x10   : > { %s134_s28 = scalar_lea.vmem [#allocation2], %s394_s24  ;;  %p670_p9 = pnand %p417_p8, %p645_p3 }
  0x11   : > { %s142_s29 = sshll.u32 %s134_s28, 4  ;;  %s131_s3 = scalar_lea.sflag [#allocation3], %s661_s22  ;;  %s143_s29 = int_to_ptr.vmem [resolvable:$true] %s142_s29 }
  0x12   : > { %p479_p10 = pneg %p670_p9  ;;  %s490_s4 = scalar_lea.vmem %s143_s29, 512 }
  0x13   : > { %p491_p11 = scmp.ne.s32.totalorder %s143_s29, %s490_s4  ;;  %s589_s5 = smov [#allocation2]  }
  0x14   : > { %s495_s6 = sshll.u32 %s589_s5, 4  ;;  %s496_s6 = int_to_ptr.vmem [resolvable:$false] %s495_s6 }
  0x15   : > { %p493_p12 = pnand %p491_p11, %p479_p10  ;;  %s497_s7 = scalar_lea.vmem %s496_s6, 1024 }
  0x16   : > { %p498_p0 = scmp.lt.s32.totalorder %s143_s29, %s496_s6  ;;  %p499_p1 = scmp.lt.s32.totalorder %s497_s7, %s490_s4 }
  0x17   : > { %p494_p13 = pneg %p493_p12 }
  0x18   : > { %p500_p2 = por %p499_p1, %p498_p0 }
  0x1a   : > { %p501_p3 = pnand %p500_p2, %p494_p13 }
  0x1c   : > { %504 = shalt.err (!%p501_p3)
}
  0x1d   : > { %s590_s8 = smov 128   ;;  %s591_s9 = smov 8  }
  0x1e   : > { %413 = dma.hbm_to_vmem [thread:$0]  (!%p670_p9), %s141_s27, 512, %s143_s29, %s131_s3, %s590_s8, %s590_s8, %s591_s9  }
  0x1f   : > { %p399_p4 = scmp.ge.s32.totalorder %s587_s14, 1  ;;  %p169_p5 = scmp.lt.s32.totalorder %s587_s14, 3 }
  0x20   : > { %s397_s15 = sshll.u32 %s661_s22, 3  ;;  %s398_s18 = sshll.u32 %s583_s13, 7 }
  0x21   : > { %p685_p6 = pnand %p399_p4, %p169_p5  ;;  %s156_s19 = scalar_lea.vmem [#allocation4], %s397_s15 }
  0x22   : > { %s164_s23 = sshll.u32 %s156_s19, 4  ;;  %s162_s26 = scalar_lea.hbm %s739_s1, %s398_s18  ;;  %s165_s23 = int_to_ptr.vmem [resolvable:$true] %s164_s23 }
  0x23   : > { %s153_s28 = scalar_lea.sflag [#allocation5], %s661_s22  ;;  %s518_s4 = scalar_lea.vmem %s165_s23, 128 }
  0x24   : > { %p519_p8 = scmp.ne.s32.totalorder %s165_s23, %s518_s4  ;;  %s592_s27 = smov [#allocation4]  }
  0x25   : > { %s523_s29 = sshll.u32 %s592_s27, 4  ;;  %s524_s29 = int_to_ptr.vmem [resolvable:$false] %s523_s29 }
  0x26   : > { %p521_p11 = pnand %p519_p8, %p479_p10  ;;  %s525_s3 = scalar_lea.vmem %s524_s29, 256 }
  0x27   : > { %p526_p13 = scmp.lt.s32.totalorder %s165_s23, %s524_s29  ;;  %p527_p0 = scmp.lt.s32.totalorder %s525_s3, %s518_s4 }
  0x28   : > { %p522_p12 = pneg %p521_p11 }
  0x29   : > { %p528_p1 = por %p527_p0, %p526_p13 }
  0x2b   : > { %p529_p2 = pnand %p528_p1, %p522_p12 }
  0x2d   : > { %532 = shalt.err (!%p529_p2)
}
  0x2e   : > { %416 = dma.hbm_to_vmem [thread:$0]  (!%p670_p9), %s162_s26, 128, %s165_s23, %s153_s28  }
  0x2f   : > { %173 = sbr.rel (%p685_p6) target bundleno = 102 (0x66), region = 28  ;;  %s175_s22 = sand.u32 (!%p685_p6), 1, %s571_s10  }
  0x30   : > { %s400_s5 = sshll.u32 (!%p685_p6), %s175_s22, 5  ;;  %s176_s6 = scalar_lea.sflag (!%p685_p6), [#allocation3], %s175_s22 }
  0x31   : > { %s179_s7 = scalar_lea.vmem (!%p685_p6), [#allocation2], %s400_s5 }
  0x34   : > { %558 = dma.done.wait (%p652_p7), %s176_s6, 512  }
  0x35   : > { %560 = vsyncadd (%p652_p7), %s176_s6, 4294966784  ;;  %s401_s8 = sshll.u32 %s175_s22, 3  ;;  %s185_s9 = scalar_lea.sflag [#allocation5], %s175_s22 }
  0x36   : > { %s188_s15 = scalar_lea.vmem [#allocation4], %s401_s8 }
  0x37   : > { %562 = dma.done.wait (%p652_p7), %s185_s9, 128  }
  0x38   : > { %564 = vsyncadd (%p652_p7), %s185_s9, 4294967168  ;;  %p216_p9 = scmp.lt.s32.totalorder %s579_s12, 1  ;;  %v593_v0 = vmov 0.0   ;;  %v225_v1 = vld [vmem:[%s179_s7] sm:$0xff]  ;;  %v226_v2 = vld [vmem:[%s179_s7 + $0x8] sm:$0xff]  ;;  %vm286_vm0 = vcmask 1040384  }
  0x39   : > { %v227_v3 = vld [vmem:[%s179_s7 + $0x10] sm:$0xff]  ;;  %v228_v4 = vld [vmem:[%s179_s7 + $0x18] sm:$0xff]  ;;  %v229_v5 = vld [vmem:[%s188_s15] sm:$0xff]  ;;  %v238_v6 = vmul.f32 0.5, %v225_v1  ;;  %v239_v7 = vmul.f32 0.5, %v226_v2  ;;  %vm288_vm1 = vcmask 1041408  }
  0x3a   : > { %s753_s12 = smov (!%p216_p9, %s579_s12), 1  ;;  %v230_v8 = vunpack.c.0.s8 %v229_v5  ;;  %v231_v9 = vunpack.c.1.s8 %v229_v5  ;;  %v232_v10 = vunpack.c.2.s8 %v229_v5  ;;  %v240_v11 = vmul.f32 0.5, %v227_v3 }
  0x3b   : > { %s402_s30 = sshll.u32 %s753_s12, 2  ;;  %v241_v12 = vmul.f32 0.5, %v228_v4  ;;  %469 = vtanh.f32 %v238_v6  ;;  %v233_v15 = vunpack.c.3.s8 %v229_v5 }
  0x3c   : > { %s715_s19 = scalar_lea.vmem %s740_s2, %s402_s30  ;;  %v234_v13 = vcvt.s32.f32 %v230_v8  ;;  %v235_v14 = vcvt.s32.f32 %v231_v9  ;;  %v236_v16 = vcvt.s32.f32 %v232_v10  ;;  %471 = vtanh.f32 %v239_v7 }
  0x3d   : > { %224 = vst [vmem:[%s715_s19] sm:$0x7] %v593_v0  ;;  %473 = vtanh.f32 %v240_v11  ;;  %v237_v18 = vcvt.s32.f32 %v233_v15 }
  0x3e   : > { %v263_v17 = vadd.f32 %v235_v14, %v234_v13  ;;  %475 = vtanh.f32 %v241_v12 }
  0x40   : > { %v264_v19 = vadd.f32 %v263_v17, %v236_v16 }
  0x42   : > { %v265_v20 = vadd.f32 %v264_v19, %v237_v18 }
  0x44   : > { %v266_v23 = vrot.slane %v265_v20, 4  ;;  %v285_v61 = vld [vmem:[%s715_s19] sm:$0x7] }
  0x46   : > { %v267_v32 = vadd.f32 %v266_v23, %v265_v20 }
  0x48   : > { %v470_v21 = vpop.eup %469  ;;  %v268_v40 = vrot.slane %v267_v32, 2 }
  0x49   : > { %v246_v22 = vmul.f32 0.5, %v470_v21  ;;  %v472_v24 = vpop.eup %471 }
  0x4a   : > { %v474_v25 = vpop.eup %473  ;;  %v247_v26 = vmul.f32 0.5, %v472_v24  ;;  %v269_v46 = vadd.f32 %v268_v40, %v267_v32 }
  0x4b   : > { %v250_v27 = vadd.f32 0.5, %v246_v22  ;;  %v476_v28 = vpop.eup %475  ;;  %v248_v29 = vmul.f32 0.5, %v474_v25 }
  0x4c   : > { %v249_v30 = vmul.f32 0.5, %v476_v28  ;;  %v251_v31 = vadd.f32 0.5, %v247_v26  ;;  %v270_v51 = vrot.slane %v269_v46, 1 }
  0x4d   : > { %v272_v33 = vmul.f32 %v250_v27, %v234_v13  ;;  %v252_v34 = vadd.f32 0.5, %v248_v29 }
  0x4e   : > { %v253_v35 = vadd.f32 0.5, %v249_v30  ;;  %v254_v36 = vadd.f32 %v251_v31, %v250_v27  ;;  %v273_v37 = vmul.f32 %v251_v31, %v235_v14  ;;  %v271_v56 = vadd.f32 %v270_v51, %v269_v46 }
  0x4f   : > { %v274_v38 = vmul.f32 %v252_v34, %v236_v16 }
  0x50   : > { %v255_v39 = vadd.f32 %v254_v36, %v252_v34  ;;  %v275_v41 = vmul.f32 %v253_v35, %v237_v18  ;;  %v276_v42 = vadd.f32 %v273_v37, %v272_v33 }
  0x52   : > { %v256_v43 = vadd.f32 %v255_v39, %v253_v35  ;;  %v277_v44 = vadd.f32 %v276_v42, %v274_v38 }
  0x54   : > { %v257_v45 = vrot.slane %v256_v43, 4  ;;  %v278_v47 = vadd.f32 %v277_v44, %v275_v41 }
  0x56   : > { %v258_v48 = vadd.f32 %v257_v45, %v256_v43  ;;  %v279_v49 = vrot.slane %v278_v47, 4 }
  0x58   : > { %v259_v50 = vrot.slane %v258_v48, 2  ;;  %v280_v52 = vadd.f32 %v279_v49, %v278_v47 }
  0x5a   : > { %v260_v53 = vadd.f32 %v259_v50, %v258_v48  ;;  %v281_v54 = vrot.slane %v280_v52, 2 }
  0x5c   : > { %v261_v55 = vrot.slane %v260_v53, 1  ;;  %v282_v57 = vadd.f32 %v281_v54, %v280_v52 }
  0x5e   : > { %v262_v58 = vadd.f32 %v261_v55, %v260_v53  ;;  %v283_v59 = vrot.slane %v282_v57, 1 }
  0x60   : > { %v284_v60 = vadd.f32 %v283_v59, %v282_v57  ;;  %v287_v62 = vsel %vm286_vm0, %v262_v58, %v271_v56 }
  0x62   : > { %v289_v63 = vsel %vm288_vm1, %v287_v62, %v284_v60 }
  0x63   : > { %v290_v0 = vadd.f32 %v289_v63, %v285_v61 }
  0x65   : > { %291 = vst [vmem:[%s715_s19] sm:$0x7] %v290_v0 }
  0x66 PF: > { %s18_s14 = sadd.s32 1, %s587_s14   ;;  %s745_s9 = smov %s571_s10 }
  0x67   : > { %p15_p7 = scmp.ge.s32.totalorder %s18_s14, 4   ;;  %s746_s10 = smov %s575_s11 }
  0x68   : > { %s747_s11 = smov %s658_s21  ;;  %s748_s12 = smov %s583_s13 }
  0x69   : > { %s749_s13 = smov %s751_s16  ;;  %17 = sbr.rel (!%p15_p7) target bundleno = 6 (0x6), region = 85 }
  0x6e   :  { %311 = vsyncpa [#allocation3], 1 }
  0x6f   :  { %313 = vsyncpa [#allocation3 + $0x1], 1 }
  0x70   :  { %314 = vsyncpa [#allocation5], 1 }
  0x71   :  { %316 = vsyncpa [#allocation5 + $0x1], 1 }

</bundles_post_ra>
